<compile_context>
chip_gen: v7x
topology: tpu7x:2x2x1
jax: 0.10.0
libtpu: 0.0.40
codegen_flags: <defaults>
</compile_context>

<pallas_src>
import jax
import jax.numpy as jnp
from jax.experimental import pallas as pl
from jax.experimental.pallas import tpu as pltpu


LANE = 128
TARGET_STEP_BYTES = 6 * 1024 * 1024   # aim for >= ~6 MB of HBM I/O per grid step


def _cdiv(a, b):
    return (a + b - 1) // b


# ----------------------------------------------------------------------------
# Kernel
# ----------------------------------------------------------------------------
def _bottleneck_kernel(x_ref,
                       w1_ref, b1_ref,
                       w2_ref, b2_ref,
                       w3_ref, b3_ref,
                       o_ref):
    # x_ref / o_ref: (NB, C, T) bf16 tiles; weights bf16; biases f32 (C, 1).
    nb = x_ref.shape[0]
    for b in range(nb):                      # static unroll over the batch block
        # conv1 (1x1) + folded bn1 + relu
        h = jnp.dot(w1_ref[...], x_ref[b], preferred_element_type=jnp.float32)
        h = jnp.maximum(h + b1_ref[...], 0.0)

        # conv2 (1x1, stride 1) + folded bn2 + relu
        h = jnp.dot(w2_ref[...], h.astype(jnp.bfloat16),
                    preferred_element_type=jnp.float32)
        h = jnp.maximum(h + b2_ref[...], 0.0)

        # conv3 (1x1) + folded bn3
        h = jnp.dot(w3_ref[...], h.astype(jnp.bfloat16),
                    preferred_element_type=jnp.float32)
        h = h + b3_ref[...]

        # residual add (Cout == Cin, no downsample) + relu.  x_ref is re-read
        # here instead of being held live across the three matmuls.
        h = h + x_ref[b].astype(jnp.float32)
        o_ref[b] = jnp.maximum(h, 0.0).astype(o_ref.dtype)


# ----------------------------------------------------------------------------
# Tiling / VMEM budgeting
# ----------------------------------------------------------------------------
def _vmem_budget_bytes():
    """Per-generation VMEM budget for the tile picker (and the scoped limit)."""
    try:
        cap = int(getattr(pltpu.get_tpu_info(), "vmem_capacity_bytes"))
    except Exception:
        cap = 64 * 1024 * 1024                     # conservative fallback (v7x size)
    if cap >= 96 * 1024 * 1024:                    # v5e / v6e: 128 MiB physical
        return 80 * 1024 * 1024
    return 28 * 1024 * 1024                        # v7x: 64 MiB, shared w/ compiler


def _choose_tiling(N, HW, Cin, P, Cout, budget_bytes):
    """Pick (spatial tile, batch block) so that double-buffered bf16 I/O tiles,
    resident weights/biases and in-kernel intermediates fit the budget."""
    hw_lane = _cdiv(HW, LANE) * LANE
    # bytes per lane column (per image in the batch block):
    io_col = 2 * 2 * Cin + 2 * 2 * Cout            # bf16 in/out, double-buffered
    inter_col = 6 * P + 4 * Cin + 8 * Cout         # peak live f32/bf16 intermediates
    w_bytes = 2 * 2 * (P * Cin + P * P + Cout * P)  # bf16 weights, double-buffered
    b_bytes = 2 * 4 * (2 * P + Cout)                # f32 biases, double-buffered
    avail = max(budget_bytes - w_bytes - b_bytes, (io_col + inter_col) * LANE)

    t_hw = (avail // (io_col + inter_col)) // LANE * LANE
    t_hw = int(max(LANE, min(t_hw, hw_lane)))

    nb = 1
    if t_hw == hw_lane and N > 1:
        # One tile covers the whole image: amortize the ~0.35us per-step cost
        # by batching images into a grid step, but keep the batch grid axis at
        # extent >= 2 so both v7x TensorCores get work.
        cap = max(1, int((avail - inter_col * hw_lane) // (io_col * hw_lane)))
        img_payload = 2 * (Cin + Cout) * hw_lane   # bf16 HBM bytes moved per image
        want = max(1, min(cap, _cdiv(TARGET_STEP_BYTES, img_payload), N // 2))
        for cand in range(min(want, N), 0, -1):
            if N % cand == 0:
                nb = cand
                break
    return t_hw, nb


# ----------------------------------------------------------------------------
# Wrapper
# ----------------------------------------------------------------------------
def bottleneck_forward(x_nchw, folded_params):
    """x_nchw: (N, Cin, H, W), any float dtype (ideally already bf16).
    Returns (N, 4*planes, H, W) bf16."""
    w1f, b1, w2f, b2, w3f, b3 = folded_params
    N, Cin, H, W = x_nchw.shape
    P = w1f.shape[0]
    Cout = w3f.shape[0]
    assert Cout == Cin, "residual add requires inplanes == 4*planes (no downsample)"

    HW = H * W
    budget = _vmem_budget_bytes()
    t_hw, nb = _choose_tiling(N, HW, Cin, P, Cout, budget)
    hw_pad = _cdiv(HW, t_hw) * t_hw

    # bf16 activation at the pallas_call boundary (no-op if already bf16).
    xm = x_nchw.reshape(N, Cin, HW).astype(jnp.bfloat16)
    if hw_pad != HW:
        xm = jnp.pad(xm, ((0, 0), (0, 0), (0, hw_pad - HW)))

    grid = (N // nb, hw_pad // t_hw)

    def full(a):  # whole-array resident block (weights / biases)
        nd = a.ndim
        # TODO(synk): on v7x, pipeline_mode=pl.Buffered(1) would single-buffer
        # these grid-invariant operands; left at the default for lowering
        # portability (footprint is tiny after the bf16 / accounting changes).
        return pl.BlockSpec(a.shape, lambda i, j: (0,) * nd)

    out_pad = pl.pallas_call(
        _bottleneck_kernel,
        out_shape=jax.ShapeDtypeStruct((N, Cout, hw_pad), jnp.bfloat16),
        grid_spec=pltpu.PrefetchScalarGridSpec(
            num_scalar_prefetch=0,
            grid=grid,
            in_specs=[
                pl.BlockSpec((nb, Cin, t_hw), lambda i, j: (i, 0, j)),  # x
                full(w1f), full(b1),      # conv1 / bn1 (folded)
                full(w2f), full(b2),      # conv2 / bn2 (folded)
                full(w3f), full(b3),      # conv3 / bn3 (folded)
            ],
            out_specs=pl.BlockSpec((nb, Cout, t_hw), lambda i, j: (i, 0, j)),
        ),
        compiler_params=pltpu.CompilerParams(
            dimension_semantics=("parallel", "parallel"),
            vmem_limit_bytes=budget + 8 * 1024 * 1024,
        ),
    )(xm, w1f, b1, w2f, b2, w3f, b3)

    if hw_pad != HW:
        out_pad = out_pad[:, :, :HW]
    return out_pad.reshape(N, Cout, H, W)


# ----------------------------------------------------------------------------
# Parameters (synthetic, module-shaped) + BN folding
# ----------------------------------------------------------------------------
def make_params(key, inplanes, planes):
    """Raw module-like params: conv weights (cout, cin) and BN (gamma, beta,
    running_mean, running_var) per layer."""
    ks = jax.random.split(key, 6)
    out4 = planes * 4

    def conv_w(k, cout, cin):
        return jax.random.normal(k, (cout, cin), jnp.float32) * 0.1

    def bn_p(k, c):
        k0, k1, k2, k3 = jax.random.split(k, 4)
        gamma = 1.0 + 0.1 * jax.random.normal(k0, (c,), jnp.float32)
        beta = 0.1 * jax.random.normal(k1, (c,), jnp.float32)
        mean = 0.1 * jax.random.normal(k2, (c,), jnp.float32)
        var = jnp.abs(0.5 + 0.1 * jax.random.normal(k3, (c,), jnp.float32))
        return gamma, beta, mean, var

    w1 = conv_w(ks[0], planes, inplanes)
    w2 = conv_w(ks[1], planes, planes)
    w3 = conv_w(ks[2], out4, planes)
    return (w1, bn_p(ks[3], planes), w2, bn_p(ks[4], planes), w3, bn_p(ks[5], out4))


def fold_bn(raw_params, eps=1e-5):
    """Fold eval-mode BN into conv weights; cast weights to bf16, keep f32 bias."""
    w1, bn1, w2, bn2, w3, bn3 = raw_params

    def fold(w, bn):
        gamma, beta, mean, var = bn
        scale = gamma / jnp.sqrt(var + eps)                         # (cout,)
        wf = (w * scale[:, None]).astype(jnp.bfloat16)              # (cout, cin)
        bias = (beta - mean * scale)[:, None].astype(jnp.float32)   # (cout, 1)
        return wf, bias

    w1f, b1 = fold(w1, bn1)
    w2f, b2 = fold(w2, bn2)
    w3f, b3 = fold(w3, bn3)
    return w1f, b1, w2f, b2, w3f, b3


# ----------------------------------------------------------------------------
# References
# ----------------------------------------------------------------------------
def _reference_folded(x_nchw, folded_params):
    """Same math as the kernel (folded BN, bf16 operands, f32 acc, bf16 out)."""
    w1f, b1, w2f, b2, w3f, b3 = folded_params
    N, Cin, H, W = x_nchw.shape
    xb = x_nchw.reshape(N, Cin, H * W).astype(jnp.bfloat16)
    h = jnp.einsum('pc,ncm->npm', w1f, xb, preferred_element_type=jnp.float32)
    h = jnp.maximum(h + b1, 0.0)
    h = jnp.einsum('qp,npm->nqm', w2f, h.astype(jnp.bfloat16),
                   preferred_element_type=jnp.float32)
    h = jnp.maximum(h + b2, 0.0)
    h = jnp.einsum('op,npm->nom', w3f, h.astype(jnp.bfloat16),
                   preferred_element_type=jnp.float32)
    h = h + b3
    o = jnp.maximum(h + xb.astype(jnp.float32), 0.0).astype(jnp.bfloat16)
    return o.reshape(N, -1, H, W)


def _reference_f32(x_nchw, raw_params, eps=1e-5):
    """Module semantics (f32 conv -> eval-mode BN -> relu, unfused)."""
    w1, bn1, w2, bn2, w3, bn3 = raw_params
    N, Cin, H, W = x_nchw.shape
    xm = x_nchw.reshape(N, Cin, H * W)

    def bn_apply(h, bn):
        gamma, beta, mean, var = bn
        scale = (gamma / jnp.sqrt(var + eps))[:, None]
        bias = (beta - mean * (gamma / jnp.sqrt(var + eps)))[:, None]
        return h * scale + bias

    h = jnp.einsum('pc,ncm->npm', w1, xm)
    h = jnp.maximum(bn_apply(h, bn1), 0.0)
    h = jnp.einsum('qp,npm->nqm', w2, h)
    h = jnp.maximum(bn_apply(h, bn2), 0.0)
    h = jnp.einsum('op,npm->nom', w3, h)
    h = bn_apply(h, bn3)
    o = jnp.maximum(h + xm, 0.0)
    return o.reshape(N, -1, H, W)


# ----------------------------------------------------------------------------
if __name__ == "__main__":
    key = jax.random.PRNGKey(0)
    k_x, k_p = jax.random.split(key)

    # small shapes: batch=4, inplanes=32, planes=8 (expansion 4 -> 32), 16x16
    N, inplanes, planes, H, W = 4, 32, 8, 16, 16
    x = jax.random.normal(k_x, (N, inplanes, H, W), jnp.float32)

    raw = make_params(k_p, inplanes, planes)
    folded = fold_bn(raw)

    # bf16 activation at the kernel boundary (as the previous layer would emit).
    x_bf16 = x.astype(jnp.bfloat16)

    fwd = jax.jit(bottleneck_forward)
    out = jax.block_until_ready(fwd(x_bf16, folded))
    assert out.shape == (N, planes * 4, H, W)
    assert out.dtype == jnp.bfloat16
    out_f32 = out.astype(jnp.float32)

    # Tight check against the exact kernel math (folded BN, bf16 operands/out).
    ref_tight = _reference_folded(x, folded).astype(jnp.float32)
    assert jnp.allclose(out_f32, ref_tight, atol=1e-2, rtol=1e-2), (
        float(jnp.max(jnp.abs(out_f32 - ref_tight))))

    # Loose check against the original f32 module semantics (bf16 rounding).
    ref_f32 = _reference_f32(x, raw)
    assert jnp.allclose(out_f32, ref_f32, atol=7.5e-2, rtol=7.5e-2), (
        float(jnp.max(jnp.abs(out_f32 - ref_f32))))

    print("KERNEL_OK")
</pallas_src>

<mosaic_0001>
module attributes {stable_mosaic.version = 11 : i64} {
  func.func @_bottleneck_kernel(%arg0: i32, %arg1: i32, %arg2: memref<2x32x256xbf16, #tpu.memory_space<vmem>>, %arg3: memref<8x32xbf16, #tpu.memory_space<vmem>>, %arg4: memref<8x1xf32, #tpu.memory_space<vmem>>, %arg5: memref<8x8xbf16, #tpu.memory_space<vmem>>, %arg6: memref<8x1xf32, #tpu.memory_space<vmem>>, %arg7: memref<32x8xbf16, #tpu.memory_space<vmem>>, %arg8: memref<32x1xf32, #tpu.memory_space<vmem>>, %arg9: memref<2x32x256xbf16, #tpu.memory_space<vmem>>) attributes {dimension_semantics = [#tpu.dimension_semantics<parallel>, #tpu.dimension_semantics<parallel>], iteration_bounds = array<i64: 2, 1>, scalar_prefetch = 0 : i64, scratch_operands = 0 : i64, tpu.core_type = #tpu.core_type<tc>, window_params = [{transform_indices = @transform_0, window_bounds = array<i64: 2, 32, 256>}, {pipeline_mode = #tpu.pipeline_mode<synchronous>, transform_indices = @transform_1, window_bounds = array<i64: 8, 32>}, {pipeline_mode = #tpu.pipeline_mode<synchronous>, transform_indices = @transform_2, window_bounds = array<i64: 8, 1>}, {pipeline_mode = #tpu.pipeline_mode<synchronous>, transform_indices = @transform_3, window_bounds = array<i64: 8, 8>}, {pipeline_mode = #tpu.pipeline_mode<synchronous>, transform_indices = @transform_4, window_bounds = array<i64: 8, 1>}, {pipeline_mode = #tpu.pipeline_mode<synchronous>, transform_indices = @transform_5, window_bounds = array<i64: 32, 8>}, {pipeline_mode = #tpu.pipeline_mode<synchronous>, transform_indices = @transform_6, window_bounds = array<i64: 32, 1>}, {transform_indices = @transform_7, window_bounds = array<i64: 2, 32, 256>}]} {
    %c0 = arith.constant 0 : index
    %c0_0 = arith.constant 0 : index
    %0 = vector.load %arg3[%c0, %c0_0] : memref<8x32xbf16, #tpu.memory_space<vmem>>, vector<8x32xbf16>
    %c0_1 = arith.constant 0 : index
    %c0_2 = arith.constant 0 : index
    %c0_3 = arith.constant 0 : index
    %1 = vector.load %arg2[%c0_1, %c0_2, %c0_3] : memref<2x32x256xbf16, #tpu.memory_space<vmem>>, vector<1x32x256xbf16>
    %2 = vector.shape_cast %1 : vector<1x32x256xbf16> to vector<32x256xbf16>
    %cst = arith.constant dense<0.000000e+00> : vector<8x256xf32>
    %3 = tpu.matmul %0, %2, %cst {dimension_numbers = #tpu.dot_dimension_numbers<[1], [0], [0], [1], [0, 0, 1, 1], [], []>} : vector<8x32xbf16>, vector<32x256xbf16>, vector<8x256xf32> -> vector<8x256xf32>
    %c0_4 = arith.constant 0 : index
    %c0_5 = arith.constant 0 : index
    %4 = vector.load %arg4[%c0_4, %c0_5] : memref<8x1xf32, #tpu.memory_space<vmem>>, vector<8x1xf32>
    %5 = vector.broadcast %4 : vector<8x1xf32> to vector<8x256xf32>
    %6 = arith.addf %3, %5 : vector<8x256xf32>
    %cst_6 = arith.constant 0.000000e+00 : f32
    %7 = vector.broadcast %cst_6 : f32 to vector<8x256xf32>
    %8 = arith.maximumf %6, %7 : vector<8x256xf32>
    %c0_7 = arith.constant 0 : index
    %c0_8 = arith.constant 0 : index
    %9 = vector.load %arg5[%c0_7, %c0_8] : memref<8x8xbf16, #tpu.memory_space<vmem>>, vector<8x8xbf16>
    %10 = arith.truncf %8 : vector<8x256xf32> to vector<8x256xbf16>
    %cst_9 = arith.constant dense<0.000000e+00> : vector<8x256xf32>
    %11 = tpu.matmul %9, %10, %cst_9 {dimension_numbers = #tpu.dot_dimension_numbers<[1], [0], [0], [1], [0, 0, 1, 1], [], []>} : vector<8x8xbf16>, vector<8x256xbf16>, vector<8x256xf32> -> vector<8x256xf32>
    %c0_10 = arith.constant 0 : index
    %c0_11 = arith.constant 0 : index
    %12 = vector.load %arg6[%c0_10, %c0_11] : memref<8x1xf32, #tpu.memory_space<vmem>>, vector<8x1xf32>
    %13 = vector.broadcast %12 : vector<8x1xf32> to vector<8x256xf32>
    %14 = arith.addf %11, %13 : vector<8x256xf32>
    %cst_12 = arith.constant 0.000000e+00 : f32
    %15 = vector.broadcast %cst_12 : f32 to vector<8x256xf32>
    %16 = arith.maximumf %14, %15 : vector<8x256xf32>
    %c0_13 = arith.constant 0 : index
    %c0_14 = arith.constant 0 : index
    %17 = vector.load %arg7[%c0_13, %c0_14] : memref<32x8xbf16, #tpu.memory_space<vmem>>, vector<32x8xbf16>
    %18 = arith.truncf %16 : vector<8x256xf32> to vector<8x256xbf16>
    %cst_15 = arith.constant dense<0.000000e+00> : vector<32x256xf32>
    %19 = tpu.matmul %17, %18, %cst_15 {dimension_numbers = #tpu.dot_dimension_numbers<[1], [0], [0], [1], [0, 0, 1, 1], [], []>} : vector<32x8xbf16>, vector<8x256xbf16>, vector<32x256xf32> -> vector<32x256xf32>
    %c0_16 = arith.constant 0 : index
    %c0_17 = arith.constant 0 : index
    %20 = vector.load %arg8[%c0_16, %c0_17] : memref<32x1xf32, #tpu.memory_space<vmem>>, vector<32x1xf32>
    %21 = vector.broadcast %20 : vector<32x1xf32> to vector<32x256xf32>
    %22 = arith.addf %19, %21 : vector<32x256xf32>
    %c0_18 = arith.constant 0 : index
    %c0_19 = arith.constant 0 : index
    %c0_20 = arith.constant 0 : index
    %23 = vector.load %arg2[%c0_18, %c0_19, %c0_20] : memref<2x32x256xbf16, #tpu.memory_space<vmem>>, vector<1x32x256xbf16>
    %24 = vector.shape_cast %23 : vector<1x32x256xbf16> to vector<32x256xbf16>
    %25 = arith.extf %24 : vector<32x256xbf16> to vector<32x256xf32>
    %26 = arith.addf %22, %25 : vector<32x256xf32>
    %cst_21 = arith.constant 0.000000e+00 : f32
    %27 = vector.broadcast %cst_21 : f32 to vector<32x256xf32>
    %28 = arith.maximumf %26, %27 : vector<32x256xf32>
    %29 = arith.truncf %28 : vector<32x256xf32> to vector<32x256xbf16>
    %c0_22 = arith.constant 0 : index
    %c0_23 = arith.constant 0 : index
    %c0_24 = arith.constant 0 : index
    %30 = vector.load %arg9[%c0_22, %c0_23, %c0_24] : memref<2x32x256xbf16, #tpu.memory_space<vmem>>, vector<1x32x256xbf16>
    %31 = vector.shape_cast %30 : vector<1x32x256xbf16> to vector<32x256xbf16>
    %32 = vector.shape_cast %29 : vector<32x256xbf16> to vector<1x32x256xbf16>
    tpu.vector_store %arg9[%c0_22, %c0_23, %c0_24], %32 {strides = array<i32>} : memref<2x32x256xbf16, #tpu.memory_space<vmem>>, vector<1x32x256xbf16>,
    %c0_25 = arith.constant 0 : index
    %c0_26 = arith.constant 0 : index
    %33 = vector.load %arg3[%c0_25, %c0_26] : memref<8x32xbf16, #tpu.memory_space<vmem>>, vector<8x32xbf16>
    %c1 = arith.constant 1 : index
    %c0_27 = arith.constant 0 : index
    %c0_28 = arith.constant 0 : index
    %34 = vector.load %arg2[%c1, %c0_27, %c0_28] : memref<2x32x256xbf16, #tpu.memory_space<vmem>>, vector<1x32x256xbf16>
    %35 = vector.shape_cast %34 : vector<1x32x256xbf16> to vector<32x256xbf16>
    %cst_29 = arith.constant dense<0.000000e+00> : vector<8x256xf32>
    %36 = tpu.matmul %33, %35, %cst_29 {dimension_numbers = #tpu.dot_dimension_numbers<[1], [0], [0], [1], [0, 0, 1, 1], [], []>} : vector<8x32xbf16>, vector<32x256xbf16>, vector<8x256xf32> -> vector<8x256xf32>
    %c0_30 = arith.constant 0 : index
    %c0_31 = arith.constant 0 : index
    %37 = vector.load %arg4[%c0_30, %c0_31] : memref<8x1xf32, #tpu.memory_space<vmem>>, vector<8x1xf32>
    %38 = vector.broadcast %37 : vector<8x1xf32> to vector<8x256xf32>
    %39 = arith.addf %36, %38 : vector<8x256xf32>
    %cst_32 = arith.constant 0.000000e+00 : f32
    %40 = vector.broadcast %cst_32 : f32 to vector<8x256xf32>
    %41 = arith.maximumf %39, %40 : vector<8x256xf32>
    %c0_33 = arith.constant 0 : index
    %c0_34 = arith.constant 0 : index
    %42 = vector.load %arg5[%c0_33, %c0_34] : memref<8x8xbf16, #tpu.memory_space<vmem>>, vector<8x8xbf16>
    %43 = arith.truncf %41 : vector<8x256xf32> to vector<8x256xbf16>
    %cst_35 = arith.constant dense<0.000000e+00> : vector<8x256xf32>
    %44 = tpu.matmul %42, %43, %cst_35 {dimension_numbers = #tpu.dot_dimension_numbers<[1], [0], [0], [1], [0, 0, 1, 1], [], []>} : vector<8x8xbf16>, vector<8x256xbf16>, vector<8x256xf32> -> vector<8x256xf32>
    %c0_36 = arith.constant 0 : index
    %c0_37 = arith.constant 0 : index
    %45 = vector.load %arg6[%c0_36, %c0_37] : memref<8x1xf32, #tpu.memory_space<vmem>>, vector<8x1xf32>
    %46 = vector.broadcast %45 : vector<8x1xf32> to vector<8x256xf32>
    %47 = arith.addf %44, %46 : vector<8x256xf32>
    %cst_38 = arith.constant 0.000000e+00 : f32
    %48 = vector.broadcast %cst_38 : f32 to vector<8x256xf32>
    %49 = arith.maximumf %47, %48 : vector<8x256xf32>
    %c0_39 = arith.constant 0 : index
    %c0_40 = arith.constant 0 : index
    %50 = vector.load %arg7[%c0_39, %c0_40] : memref<32x8xbf16, #tpu.memory_space<vmem>>, vector<32x8xbf16>
    %51 = arith.truncf %49 : vector<8x256xf32> to vector<8x256xbf16>
    %cst_41 = arith.constant dense<0.000000e+00> : vector<32x256xf32>
    %52 = tpu.matmul %50, %51, %cst_41 {dimension_numbers = #tpu.dot_dimension_numbers<[1], [0], [0], [1], [0, 0, 1, 1], [], []>} : vector<32x8xbf16>, vector<8x256xbf16>, vector<32x256xf32> -> vector<32x256xf32>
    %c0_42 = arith.constant 0 : index
    %c0_43 = arith.constant 0 : index
    %53 = vector.load %arg8[%c0_42, %c0_43] : memref<32x1xf32, #tpu.memory_space<vmem>>, vector<32x1xf32>
    %54 = vector.broadcast %53 : vector<32x1xf32> to vector<32x256xf32>
    %55 = arith.addf %52, %54 : vector<32x256xf32>
    %c1_44 = arith.constant 1 : index
    %c0_45 = arith.constant 0 : index
    %c0_46 = arith.constant 0 : index
    %56 = vector.load %arg2[%c1_44, %c0_45, %c0_46] : memref<2x32x256xbf16, #tpu.memory_space<vmem>>, vector<1x32x256xbf16>
    %57 = vector.shape_cast %56 : vector<1x32x256xbf16> to vector<32x256xbf16>
    %58 = arith.extf %57 : vector<32x256xbf16> to vector<32x256xf32>
    %59 = arith.addf %55, %58 : vector<32x256xf32>
    %cst_47 = arith.constant 0.000000e+00 : f32
    %60 = vector.broadcast %cst_47 : f32 to vector<32x256xf32>
    %61 = arith.maximumf %59, %60 : vector<32x256xf32>
    %62 = arith.truncf %61 : vector<32x256xf32> to vector<32x256xbf16>
    %c1_48 = arith.constant 1 : index
    %c0_49 = arith.constant 0 : index
    %c0_50 = arith.constant 0 : index
    %63 = vector.load %arg9[%c1_48, %c0_49, %c0_50] : memref<2x32x256xbf16, #tpu.memory_space<vmem>>, vector<1x32x256xbf16>
    %64 = vector.shape_cast %63 : vector<1x32x256xbf16> to vector<32x256xbf16>
    %65 = vector.shape_cast %62 : vector<32x256xbf16> to vector<1x32x256xbf16>
    tpu.vector_store %arg9[%c1_48, %c0_49, %c0_50], %65 {strides = array<i32>} : memref<2x32x256xbf16, #tpu.memory_space<vmem>>, vector<1x32x256xbf16>,
    return
  }
  func.func @transform_0(%arg0: i32, %arg1: i32) -> (i32, i32, i32) {
    %c0_i32 = arith.constant 0 : i32
    %c0_i32_0 = arith.constant 0 : i32
    return %arg0, %c0_i32, %arg1 : i32, i32, i32
  }
  func.func @transform_1(%arg0: i32, %arg1: i32) -> (i32, i32) {
    %c0_i32 = arith.constant 0 : i32
    %c0_i32_0 = arith.constant 0 : i32
    %c0_i32_1 = arith.constant 0 : i32
    return %c0_i32, %c0_i32_0 : i32, i32
  }
  func.func @transform_2(%arg0: i32, %arg1: i32) -> (i32, i32) {
    %c0_i32 = arith.constant 0 : i32
    %c0_i32_0 = arith.constant 0 : i32
    %c0_i32_1 = arith.constant 0 : i32
    return %c0_i32, %c0_i32_0 : i32, i32
  }
  func.func @transform_3(%arg0: i32, %arg1: i32) -> (i32, i32) {
    %c0_i32 = arith.constant 0 : i32
    %c0_i32_0 = arith.constant 0 : i32
    %c0_i32_1 = arith.constant 0 : i32
    return %c0_i32, %c0_i32_0 : i32, i32
  }
  func.func @transform_4(%arg0: i32, %arg1: i32) -> (i32, i32) {
    %c0_i32 = arith.constant 0 : i32
    %c0_i32_0 = arith.constant 0 : i32
    %c0_i32_1 = arith.constant 0 : i32
    return %c0_i32, %c0_i32_0 : i32, i32
  }
  func.func @transform_5(%arg0: i32, %arg1: i32) -> (i32, i32) {
    %c0_i32 = arith.constant 0 : i32
    %c0_i32_0 = arith.constant 0 : i32
    %c0_i32_1 = arith.constant 0 : i32
    return %c0_i32, %c0_i32_0 : i32, i32
  }
  func.func @transform_6(%arg0: i32, %arg1: i32) -> (i32, i32) {
    %c0_i32 = arith.constant 0 : i32
    %c0_i32_0 = arith.constant 0 : i32
    %c0_i32_1 = arith.constant 0 : i32
    return %c0_i32, %c0_i32_0 : i32, i32
  }
  func.func @transform_7(%arg0: i32, %arg1: i32) -> (i32, i32, i32) {
    %c0_i32 = arith.constant 0 : i32
    %c0_i32_0 = arith.constant 0 : i32
    return %arg0, %c0_i32, %arg1 : i32, i32, i32
  }
}

</mosaic_0001>

<bundles_post_ra>
// kernel: bottleneck_forward.1
= control target key start
LH: loop header
LB: loop body
LE: loop exit
PB: predicated region body
PF: predicated region fallthrough
CT: control target
= control target key end

     0   :  { %s1179_s24 = smov 0   ;;  %s1181_s25 = smov 0   ;;  %s1355_s0 = inlined_call_operand.vmem [shape: bf16[4,32,256], index: 0, kind: input, shape index: {}]   ;;  %s1356_s1 = inlined_call_operand.vmem [shape: bf16[8,32], index: 1, kind: input, shape index: {}]   ;;  %s1357_s2 = inlined_call_operand.vmem [shape: f32[8,1], index: 2, kind: input, shape index: {}]   ;;  %s1358_s3 = inlined_call_operand.vmem [shape: bf16[8,8], index: 3, kind: input, shape index: {}]   ;;  %s1359_s4 = inlined_call_operand.vmem [shape: f32[8,1], index: 4, kind: input, shape index: {}]   ;;  %s1360_s5 = inlined_call_operand.vmem [shape: bf16[32,8], index: 5, kind: input, shape index: {}]   ;;  %s1361_s6 = inlined_call_operand.vmem [shape: f32[32,1], index: 6, kind: input, shape index: {}]   ;;  %s1362_s7 = inlined_call_operand.vmem [shape: bf16[4,32,256], index: 7, kind: output, shape index: {}]  }
   0x1   :  { %s1183_s26 = smov 0  }
   0x2 LB: > { %s29_s27 = sadd.s32 1, %s1132_s25  ;;  %p1016_p0 = scmp.ge.s32.totalorder %s1136_s26, 1  ;;  %s1136_s26 = sphi %s1183_s26, %s17_s26   ;;  %s1132_s25 = sphi %s1181_s25, %s1364_s25   ;;  %s1128_s24 = sphi %s1179_s24, %s1363_s24  }
   0x3   : > { %p31_p1 = scmp.ge.s32.totalorder %s29_s27, 2  ;;  %p260_p2 = scmp.lt.s32.totalorder %s1136_s26, 3 }
   0x5   : > { %s1366_s27 = smov (%p31_p1, %s29_s27), 0  ;;  %p261_p3 = pnand %p1016_p0, %p260_p2 }
   0x6   : > { %s1017_s28 = sshll.u32 (!%p261_p3), %s1128_s24, 1  ;;  %v332_v0 = vld [vmem:[%s1357_s2] sm:$0xff] (!%p261_p3)  ;;  %v1138_v1 = vmov (!%p261_p3), 0   ;;  %v476_v11 = vld [vmem:[%s1361_s6 + $0x10] sm:$0xff] (!%p261_p3)  ;;  %vm358_vm0 = vcmask (!%p261_p3), 261120   ;;  %vm418_vm1 = vcmask (!%p261_p3), 1043456  }
   0x7   : > { %264 = sbr.rel (%p261_p3) target bundleno = 937 (0x3a9), region = 48  ;;  %p304_p4 = scmp.lt.s32.totalorder (!%p261_p3), %s1017_s28, 3  ;;  %394 = vmatprep.mubr.bf16.mxu0 (!%p261_p3), %v1138_v1  ;;  %1100 = vset.pattern.permute.xlu0 (!%p261_p3), %v1138_v1  ;;  %v474_v2 = vld [vmem:[%s1361_s6] sm:$0xff] (!%p261_p3)  ;;  %vm414_vm2 = vcmask (!%p261_p3), 64512   ;;  %v475_v36 = vld [vmem:[%s1361_s6 + $0x8] sm:$0xff] (!%p261_p3)  ;;  %v477_v37 = vld [vmem:[%s1361_s6 + $0x18] sm:$0xff] (!%p261_p3) }
   0x8   : > { %335 = vperm.xlu0 (!%p261_p3), %1100, %v332_v0   ;;  %1101 = vset.pattern.permute.xlu1 (!%p261_p3), %v1138_v1  ;;  %v327_v12 = vld [vmem:[%s1356_s1] sm:$0xf] (!%p261_p3)  ;;  %v1111_v63 = vld [vmem:[%s1360_s5 + $0x8] sm:$0xff] (!%p261_p3)  }
   0x9   : > { %552 = vmatprep.mubr.bf16.mxu1 (!%p261_p3), %v1138_v1  ;;  %v408_v13 = vld [vmem:[%s1359_s4] sm:$0xff] (!%p261_p3) }
   0xa   : > { %411 = vperm.xlu1 (!%p261_p3), %1101, %v408_v13   ;;  %v405_v31 = vld [vmem:[%s1358_s3] sm:$0xf] (!%p261_p3) }
   0xb   : > { %v625_v35 = vld [vmem:[%s1356_s1] sm:$0xf] (!%p261_p3) }
   0xc   : > { %634 = vperm.xlu0 (!%p261_p3), %1100, %v332_v0   ;;  %v1110_v52 = vld [vmem:[%s1360_s5] sm:$0xff] (!%p261_p3)  }
   0xd   : > { %v703_v0 = vld [vmem:[%s1358_s3] sm:$0xf] (!%p261_p3) }
   0xe   : > { %s1368_s28 = smov (!%p304_p4, %s1017_s28), 3  ;;  %709 = vperm.xlu1 %1101, %v408_v13  }
   0xf   : > { %s1065_s8 = sshll.u32 %s1368_s28, 5 }
  0x10   : > { %s1212_s11 = scalar_lea.vmem %s1355_s0, %s1065_s8  ;;  %480 = vperm.xlu0 %1100, %v474_v2   ;;  %s1313_s18 = scalar_lea.vmem %s1362_s7, %s1065_s8 }
  0x11   : > { %v1218_v3 = vld [vmem:[%s1212_s11] sm:$0xff]  ;;  %v1221_v4 = vld [vmem:[%s1212_s11 + $0x8] sm:$0xff]  ;;  %v1224_v5 = vld [vmem:[%s1212_s11 + $0x10] sm:$0xff] }
  0x12   : > { %v1024_v6 = vcombine.high %v1218_v3, %v1221_v4  ;;  %v1023_v7 = vcombine.low %v1218_v3, %v1221_v4  ;;  %v1231_v8 = vld [vmem:[%s1212_s11 + $0x18] sm:$0xff]  ;;  %v1249_v22 = vld [vmem:[%s1212_s11 + $0x20] sm:$0xff]  ;;  %v1252_v23 = vld [vmem:[%s1212_s11 + $0x28] sm:$0xff]  ;;  %485 = vperm.xlu1 %1101, %v475_v36  }
  0x13   : > { %v1026_v9 = vcombine.high %v1224_v5, %v1231_v8  ;;  %v1025_v10 = vcombine.low %v1224_v5, %v1231_v8  ;;  %v1044_v27 = vcombine.high %v1249_v22, %v1252_v23  ;;  %v1258_v29 = vld [vmem:[%s1212_s11 + $0x30] sm:$0xff]  ;;  %v1261_v30 = vld [vmem:[%s1212_s11 + $0x38] sm:$0xff]  ;;  %v1043_v32 = vcombine.low %v1249_v22, %v1252_v23 }
  0x14   : > { %362 = vmatprep.subr.bf16.mxu0 %v1024_v6  ;;  %490 = vperm.xlu0 %1100, %v476_v11   ;;  %v1046_v33 = vcombine.high %v1258_v29, %v1261_v30  ;;  %v1045_v34 = vcombine.low %v1258_v29, %v1261_v30  ;;  %v573_v6 = vunpack.c.l.bf16 %v1218_v3 }
  0x15   : > { %363 = vmatpush1.bf16.msra.mxu0 %v1023_v7 }
  0x16   : > { %364 = vmatprep.subr.bf16.mxu0 %v1026_v9  ;;  %495 = vperm.xlu1 %1101, %v477_v37  }
  0x18   : > { %776 = vperm.xlu0 %1100, %v474_v2  }
  0x19   : > { %365 = vmatpush1.bf16.msra.mxu0 %v1025_v10  ;;  %v574_v10 = vunpack.c.h.bf16 %v1218_v3 }
  0x1a   : > { %781 = vperm.xlu1 %1101, %v475_v36  }
  0x1c   : > { %1027 = vmatmul.mubr.msk.bf16.vlgmr.msra.gmra.mrb[0].mxu0 %vm358_vm0, %v327_v12  ;;  %786 = vperm.xlu0 %1100, %v476_v11  }
  0x1d   : > { %457 = vmatprep.mubr.bf16.mxu0 %v1138_v1 }
  0x1e   : > { %791 = vperm.xlu1 %1101, %v477_v37   ;;  %v578_v37 = vunpack.c.h.bf16 %v1224_v5 }
  0x87   : > { %v336_v14 = vpop.permute.xlu0 %335 }
  0x89   : > { %v412_v38 = vpop.permute.xlu1 %411 }
  0x8b   : > { %v635_v50 = vpop.permute.xlu0 %634 }
  0x8d   : > { %v710_v2 = vpop.permute.xlu1 %709 }
  0x8f   : > { %v481_v7 = vpop.permute.xlu0 %480 }
  0x91   : > { %v486_v11 = vpop.permute.xlu1 %485 }
  0x93   : > { %v491_v3 = vpop.permute.xlu0 %490 }
  0xef   : > { %v396_v15 = vpop.f32.mrb[0].mxu0 }
  0xf0   : > { %v397_v16 = vadd.f32 %v396_v15, %v336_v14  ;;  %v398_v17 = vpop.f32.mrb[1].mxu0 }
  0xf1   : > { %v399_v18 = vadd.f32 %v398_v17, %v336_v14  ;;  %v400_v19 = vpop.f32.mrb[2].mxu0  ;;  %v575_v14 = vunpack.c.l.bf16 %v1221_v4  ;;  %v576_v17 = vunpack.c.h.bf16 %v1221_v4  ;;  %v577_v4 = vunpack.c.l.bf16 %v1224_v5 }
  0xf2   : > { %v403_v20 = vmax.f32 %v397_v16, 0.0  ;;  %v401_v21 = vpop.f32.mrb[3].mxu0 }
  0xf3   : > { %v404_v24 = vmax.f32 %v399_v18, 0.0 }
  0xf4   : > { %v406_v25 = vpack.c.bf16 %v403_v20, %v403_v20 }
  0xf5   : > { %v407_v26 = vpack.c.bf16 %v404_v24, %v404_v24 }
  0xf6   : > { %v420_v28 = vsel %vm418_vm1, %v406_v25, 0 }
  0xf7   : > { %1028 = vmatprep.subr.msk.bf16.mxu0 %vm418_vm1, %v407_v26 }
  0xf8   : > { %426 = vmatpush1.bf16.msra.mxu0 %v420_v28 }
  0xf9   : > { %660 = vmatprep.subr.bf16.mxu0 %v1044_v27 }
  0xfb   : > { %1029 = vmatmul.mubr.msk.bf16.vlgmr.msra.gmra.mrb[4].mxu0 %vm414_vm2, %v405_v31  ;;  %v496_v31 = vpop.permute.xlu1 %495 }
  0xfc   : > { %661 = vmatpush1.bf16.msra.mxu0 %v1043_v32  ;;  %692 = vmatprep.mubr.bf16.mxu0 %v1138_v1 }
  0xfd   : > { %662 = vmatprep.subr.bf16.mxu0 %v1046_v33 }
 0x100   : > { %663 = vmatpush1.bf16.msra.mxu0 %v1045_v34 }
 0x103   : > { %1047 = vmatmul.mubr.msk.bf16.vlgmr.msra.gmra.mrb[8].mxu0 %vm358_vm0, %v625_v35 }
 0x104   : > { %753 = vmatprep.mubr.bf16.mxu0 %v1138_v1 }
 0x1ce   : > { %v459_v39 = vpop.f32.mrb[4].mxu0 }
 0x1cf   : > { %v460_v40 = vadd.f32 %v459_v39, %v412_v38  ;;  %v461_v41 = vpop.f32.mrb[5].mxu0 }
 0x1d0   : > { %v462_v42 = vadd.f32 %v461_v41, %v412_v38  ;;  %v463_v43 = vpop.f32.mrb[6].mxu0 }
 0x1d1   : > { %v466_v44 = vmax.f32 %v460_v40, 0.0  ;;  %v464_v45 = vpop.f32.mrb[7].mxu0 }
 0x1d2   : > { %v467_v46 = vmax.f32 %v462_v42, 0.0  ;;  %v579_v42 = vunpack.c.l.bf16 %v1231_v8 }
 0x1d3   : > { %v472_v47 = vpack.c.bf16 %v466_v44, %v466_v44 }
 0x1d4   : > { %v473_v48 = vpack.c.bf16 %v467_v46, %v467_v46 }
 0x1d5   : > { %v515_v49 = vsel %vm418_vm1, %v472_v47, 0 }
 0x1d6   : > { %1032 = vmatprep.subr.msk.bf16.mxu1 %vm418_vm1, %v473_v48  ;;  %v694_v51 = vpop.f32.mrb[8].mxu0  ;;  %v580_v48 = vunpack.c.h.bf16 %v1231_v8 }
 0x1d7   : > { %v695_v53 = vadd.f32 %v694_v51, %v635_v50  ;;  %521 = vmatpush1.bf16.msra.mxu1 %v515_v49  ;;  %v696_v54 = vpop.f32.mrb[9].mxu0 }
 0x1d8   : > { %v697_v55 = vadd.f32 %v696_v54, %v635_v50  ;;  %v698_v56 = vpop.f32.mrb[10].mxu0 }
 0x1d9   : > { %v701_v57 = vmax.f32 %v695_v53, 0.0  ;;  %v699_v58 = vpop.f32.mrb[11].mxu0 }
 0x1da   : > { %v702_v59 = vmax.f32 %v697_v55, 0.0  ;;  %1033 = vmatmul.mubr.msk.bf16.vlgmr.msra.gmra.mrb[0].mxu1 %vm414_vm2, %v1110_v52 }
 0x1db   : > { %v704_v60 = vpack.c.bf16 %v701_v57, %v701_v57  ;;  %562 = vmatprep.mubr.bf16.mxu1 %v1138_v1 }
 0x1dc   : > { %v705_v61 = vpack.c.bf16 %v702_v59, %v702_v59 }
 0x1dd   : > { %v716_v62 = vsel %vm418_vm1, %v704_v60, 0 }
 0x1de   : > { %1048 = vmatprep.subr.msk.bf16.mxu0 %vm418_vm1, %v705_v61 }
 0x1df   : > { %722 = vmatpush1.bf16.msra.mxu0 %v716_v62 }
 0x1e2   : > { %1034 = vmatmul.mubr.msk.bf16.gmra.mrb[4].mxu1 %vm414_vm2, %v1111_v63  ;;  %1049 = vmatmul.mubr.msk.bf16.vlgmr.msra.gmra.mrb[12].mxu0 %vm414_vm2, %v703_v0 }
 0x1e3   : > { %848 = vmatprep.mubr.bf16.mxu1 %v1138_v1 }
 0x2ad   : > { %v554_v9 = vpop.f32.mrb[0].mxu1 }
 0x2ae   : > { %v555_v12 = vadd.f32 %v554_v9, %v481_v7  ;;  %v556_v13 = vpop.f32.mrb[1].mxu1  ;;  %v869_v9 = vunpack.c.l.bf16 %v1249_v22 }
 0x2af   : > { %v557_v15 = vadd.f32 %v556_v13, %v481_v7  ;;  %v558_v16 = vpop.f32.mrb[2].mxu1  ;;  %v1113_v7 = vld [vmem:[%s1360_s5 + $0x8] sm:$0xff]  }
 0x2b0   : > { %v581_v18 = vadd.f32 %v573_v6, %v555_v12  ;;  %v559_v19 = vadd.f32 %v558_v16, %v486_v11  ;;  %v560_v20 = vpop.f32.mrb[3].mxu1  ;;  %v870_v12 = vunpack.c.h.bf16 %v1249_v22  ;;  %v782_v16 = vpop.permute.xlu1 %781 }
 0x2b1   : > { %v582_v21 = vadd.f32 %v574_v10, %v557_v15  ;;  %v561_v24 = vadd.f32 %v560_v20, %v486_v11  ;;  %v777_v10 = vpop.permute.xlu0 %776  ;;  %v871_v15 = vunpack.c.l.bf16 %v1252_v23 }
 0x2b2   : > { %v589_v25 = vmax.f32 %v581_v18, 0.0  ;;  %v583_v26 = vadd.f32 %v575_v14, %v559_v19 }
 0x2b3   : > { %v590_v27 = vmax.f32 %v582_v21, 0.0  ;;  %v584_v28 = vadd.f32 %v576_v17, %v561_v24 }
 0x2b4   : > { %v591_v32 = vmax.f32 %v583_v26, 0.0 }
 0x2b5   : > { %v1067_v33 = vpack.c.bf16 %v590_v27, %v589_v25  ;;  %v592_v34 = vmax.f32 %v584_v28, 0.0  ;;  %v564_v35 = vpop.f32.mrb[4].mxu1  ;;  %v755_v36 = vpop.f32.mrb[12].mxu0 }
 0x2b6   : > { %v565_v38 = vadd.f32 %v564_v35, %v491_v3  ;;  %v756_v39 = vadd.f32 %v755_v36, %v710_v2  ;;  %v566_v40 = vpop.f32.mrb[5].mxu1  ;;  %v757_v41 = vpop.f32.mrb[13].mxu0 }
 0x2b7   : > { %621 = vst [vmem:[%s1313_s18] sm:$0xff] %v1067_v33  ;;  %v1068_v43 = vpack.c.bf16 %v592_v34, %v591_v32  ;;  %v567_v44 = vadd.f32 %v566_v40, %v491_v3  ;;  %v758_v45 = vadd.f32 %v757_v41, %v710_v2  ;;  %v568_v46 = vpop.f32.mrb[6].mxu1  ;;  %v759_v47 = vpop.f32.mrb[14].mxu0  ;;  %v1112_v2 = vld [vmem:[%s1360_s5] sm:$0xff]  }
 0x2b8   : > { %v585_v49 = vadd.f32 %v577_v4, %v565_v38  ;;  %v762_v50 = vmax.f32 %v756_v39, 0.0  ;;  %v569_v51 = vadd.f32 %v568_v46, %v496_v31  ;;  %v570_v52 = vpop.f32.mrb[7].mxu1  ;;  %v760_v5 = vpop.f32.mrb[15].mxu0 }
 0x2b9   : > { %622 = vst [vmem:[%s1313_s18 + $0x8] sm:$0xff] %v1068_v43  ;;  %v586_v53 = vadd.f32 %v578_v37, %v567_v44  ;;  %v763_v54 = vmax.f32 %v758_v45, 0.0  ;;  %v571_v55 = vadd.f32 %v570_v52, %v496_v31  ;;  %v873_v31 = vunpack.c.l.bf16 %v1258_v29  ;;  %v787_v32 = vpop.permute.xlu0 %786  ;;  %v792_v38 = vpop.permute.xlu1 %791 }
 0x2ba   : > { %v593_v56 = vmax.f32 %v585_v49, 0.0  ;;  %v768_v57 = vpack.c.bf16 %v762_v50, %v762_v50  ;;  %v587_v58 = vadd.f32 %v579_v42, %v569_v51  ;;  %v875_v37 = vunpack.c.l.bf16 %v1261_v30 }
 0x2bb   : > { %v594_v59 = vmax.f32 %v586_v53, 0.0  ;;  %v769_v60 = vpack.c.bf16 %v763_v54, %v763_v54  ;;  %v588_v61 = vadd.f32 %v580_v48, %v571_v55  ;;  %v876_v42 = vunpack.c.h.bf16 %v1261_v30 }
 0x2bc   : > { %v595_v62 = vmax.f32 %v587_v58, 0.0  ;;  %v811_v8 = vsel %vm418_vm1, %v768_v57, 0 }
 0x2bd   : > { %v1069_v63 = vpack.c.bf16 %v594_v59, %v593_v56  ;;  %v596_v0 = vmax.f32 %v588_v61, 0.0  ;;  %1052 = vmatprep.subr.msk.bf16.mxu1 %vm418_vm1, %v769_v60 }
 0x2be   : > { %817 = vmatpush1.bf16.msra.mxu1 %v811_v8 }
 0x2bf   : > { %623 = vst [vmem:[%s1313_s18 + $0x10] sm:$0xff] %v1069_v63  ;;  %v1070_v6 = vpack.c.bf16 %v596_v0, %v595_v62 }
 0x2c1   : > { %624 = vst [vmem:[%s1313_s18 + $0x18] sm:$0xff] %v1070_v6  ;;  %1053 = vmatmul.mubr.msk.bf16.vlgmr.msra.gmra.mrb[8].mxu1 %vm414_vm2, %v1112_v2 }
 0x2c2   : > { %858 = vmatprep.mubr.bf16.mxu1 %v1138_v1  ;;  %v872_v1 = vunpack.c.h.bf16 %v1252_v23  ;;  %v874_v23 = vunpack.c.h.bf16 %v1258_v29 }
 0x2c9   : > { %1054 = vmatmul.mubr.msk.bf16.gmra.mrb[12].mxu1 %vm414_vm2, %v1113_v7 }
 0x394   : > { %v850_v11 = vpop.f32.mrb[8].mxu1 }
 0x395   : > { %v851_v13 = vadd.f32 %v850_v11, %v777_v10  ;;  %v852_v14 = vpop.f32.mrb[9].mxu1 }
 0x396   : > { %v853_v17 = vadd.f32 %v852_v14, %v777_v10  ;;  %v854_v18 = vpop.f32.mrb[10].mxu1 }
 0x397   : > { %v877_v19 = vadd.f32 %v869_v9, %v851_v13  ;;  %v855_v20 = vadd.f32 %v854_v18, %v782_v16  ;;  %v856_v21 = vpop.f32.mrb[11].mxu1 }
 0x398   : > { %v878_v24 = vadd.f32 %v870_v12, %v853_v17  ;;  %v857_v25 = vadd.f32 %v856_v21, %v782_v16 }
 0x399   : > { %v885_v26 = vmax.f32 %v877_v19, 0.0  ;;  %v879_v27 = vadd.f32 %v871_v15, %v855_v20 }
 0x39a   : > { %v886_v28 = vmax.f32 %v878_v24, 0.0  ;;  %v880_v3 = vadd.f32 %v872_v1, %v857_v25 }
 0x39b   : > { %v887_v22 = vmax.f32 %v879_v27, 0.0 }
 0x39c   : > { %v1071_v4 = vpack.c.bf16 %v886_v28, %v885_v26  ;;  %v888_v33 = vmax.f32 %v880_v3, 0.0  ;;  %v860_v34 = vpop.f32.mrb[12].mxu1 }
 0x39d   : > { %v861_v35 = vadd.f32 %v860_v34, %v787_v32  ;;  %v862_v36 = vpop.f32.mrb[13].mxu1 }
 0x39e   : > { %1059 = vst [vmem:[%s1313_s18 + $0x20] sm:$0xff] %v1071_v4  ;;  %v1072_v39 = vpack.c.bf16 %v888_v33, %v887_v22  ;;  %v863_v40 = vadd.f32 %v862_v36, %v787_v32  ;;  %v864_v41 = vpop.f32.mrb[14].mxu1 }
 0x39f   : > { %v881_v43 = vadd.f32 %v873_v31, %v861_v35  ;;  %v865_v44 = vadd.f32 %v864_v41, %v792_v38  ;;  %v866_v45 = vpop.f32.mrb[15].mxu1 }
 0x3a0   : > { %1060 = vst [vmem:[%s1313_s18 + $0x28] sm:$0xff] %v1072_v39  ;;  %v882_v46 = vadd.f32 %v874_v23, %v863_v40  ;;  %v867_v47 = vadd.f32 %v866_v45, %v792_v38 }
 0x3a1   : > { %v889_v29 = vmax.f32 %v881_v43, 0.0  ;;  %v883_v48 = vadd.f32 %v875_v37, %v865_v44 }
 0x3a2   : > { %v890_v49 = vmax.f32 %v882_v46, 0.0  ;;  %v884_v50 = vadd.f32 %v876_v42, %v867_v47 }
 0x3a3   : > { %v891_v51 = vmax.f32 %v883_v48, 0.0 }
 0x3a4   : > { %v1073_v52 = vpack.c.bf16 %v890_v49, %v889_v29  ;;  %v892_v5 = vmax.f32 %v884_v50, 0.0 }
 0x3a6   : > { %1061 = vst [vmem:[%s1313_s18 + $0x30] sm:$0xff] %v1073_v52  ;;  %v1074_v53 = vpack.c.bf16 %v892_v5, %v891_v51 }
 0x3a8   : > { %1062 = vst [vmem:[%s1313_s18 + $0x38] sm:$0xff] %v1074_v53 }
 0x3a9 PF: > { %s17_s26 = sadd.s32 1, %s1136_s26   ;;  %s1363_s24 = smov %s1132_s25 }
 0x3aa   : > { %p14_p5 = scmp.ge.s32.totalorder %s17_s26, 4   ;;  %s1364_s25 = smov %s1366_s27 }
 0x3ac   :  { %16 = sbr.rel (!%p14_p5) target bundleno = 2 (0x2), region = 80 }

</bundles_post_ra>
